<compile_context>
chip_gen: v7x
topology: tpu7x:2x2x1
jax: 0.10.0
libtpu: 0.0.40
codegen_flags: <defaults>
</compile_context>

<pallas_src>
import math

import jax
import jax.numpy as jnp
import numpy as np
from jax import lax
from jax.experimental import pallas as pl
from jax.experimental.pallas import tpu as pltpu

LOG_SQRT_2PI = 0.5 * math.log(2.0 * math.pi)


def _softplus(x):
    # matches torch.nn.Softplus(beta=1, threshold=20); log1p for robustness
    return jnp.where(x > 20.0, x, jnp.log1p(jnp.exp(jnp.minimum(x, 20.0))))


def _gaussian_upsampling_kernel(
        seq_ref, aux_ref, enc_ref,
        wc_ref, bc_ref, wl_ref, bl_ref,
        out_ref, attn_ref,
        x_sc, a_sc, b_sc):
    T = enc_ref.shape[1]
    H = enc_ref.shape[2]
    K = wc_ref.shape[0] // 3
    TM = out_ref.shape[1]
    j = pl.program_id(1)

    # ---- per-batch work: only at the first mel tile, cached in VMEM scratch ----
    @pl.when(j == 0)
    def _():
        seq = seq_ref[0]                      # (Tpad, 3): [p | e | d], conv-padded
        enc = enc_ref[0]                      # (T, H)
        mask_row = aux_ref[0][0:1, :]         # (1, T); 1.0 => padded src position

        def conv_embed(col):
            # Conv1d(1 -> H, K, padding=(K-1)//2) as K shifted outer products.
            xpad = seq[:, col:col + 1]        # (Tpad, 1)
            emb = jnp.zeros((T, H), jnp.float32)
            for k in range(K):                # K static, small -> fully unrolled
                emb = emb + xpad[k:k + T, :] * wc_ref[col * K + k:col * K + k + 1, :]
            return emb + bc_ref[col:col + 1, :]

        p_emb = conv_embed(0)
        e_emb = conv_embed(1)
        d_emb = conv_embed(2)

        x = p_emb + e_emb + enc               # matmul rhs (no d_emb, as in torch bmm)
        x_sc[...] = x.astype(jnp.bfloat16)    # bf16 operand for the MXU

        # range parameter s = Softplus(Linear(s_input)), computed directly in
        # row orientation (1, T) so the per-tile Gaussian needs no transposes.
        s_input = x + d_emb                   # (T, H)
        s_lin = lax.dot_general(
            wl_ref[...], s_input, (((1,), (1,)), ((), ())),
            preferred_element_type=jnp.float32) + bl_ref[...]        # (1, T)
        s = _softplus(s_lin)
        s = jnp.where(mask_row > 0.0, 1e-8, s)
        # hoisted per-source coefficients: logp = a * (t - c)^2 + b
        a_sc[...] = -1.0 / (2.0 * s * s)
        # masked source positions get b = -1e30  =>  w == 0 (as in masked_fill)
        b_sc[...] = jnp.where(mask_row > 0.0, -1e30,
                              -jnp.log(s) - LOG_SQRT_2PI)

    # ---- per mel tile: Gaussian plane in MXU-native (TM, T) orientation ----
    c_row = aux_ref[0][1:2, :]                # (1, T) centers (wrapper cumsum)
    # frames for this tile: t = j*TM + 1 .. j*TM + TM, as a (TM, 1) column
    t = (lax.broadcasted_iota(jnp.int32, (TM, 1), 0).astype(jnp.float32)
         + (j * TM + 1).astype(jnp.float32))
    diff = t - c_row                                              # (TM, T)
    w = jnp.exp(diff * diff * a_sc[...] + b_sc[...])              # (TM, T)
    denom = jnp.sum(w, axis=1, keepdims=True) + 1e-8              # (TM, 1)
    attn = w * pl.reciprocal(denom, approx=True)                  # (TM, T)

    out = jnp.dot(attn.astype(jnp.bfloat16), x_sc[...],
                  preferred_element_type=jnp.float32)             # (TM, H)
    out_ref[0] = out.astype(out_ref.dtype)
    attn_ref[0] = attn.T.astype(attn_ref.dtype)                   # (T, TM)


def gaussian_upsampling_forward(encoder_outputs, p_targets, e_targets, d_target,
                                src_mask, params, *, tile_m=128,
                                vmem_limit_bytes=None):
    """Teacher-forced GaussianUpsampling.forward (d_target branch).

    tile_m: mel-frame tile (multiple of 128). Production guidance:
      v6e ~1024-2048 (raise vmem_limit_bytes), v7x ~512-1024 (~48-56 MiB VMEM
      limit), v5e ~1024-2048. 128 is the safe validated default.
    """
    B, T, H = encoder_outputs.shape
    K = params["wp"].shape[0]
    pad = (K - 1) // 2
    assert tile_m % 128 == 0, "mel tile must be lane-dense (multiple of 128)"

    d_pred = d_target.astype(jnp.float32)
    mel_len = jnp.sum(d_pred, axis=-1).astype(jnp.int32)
    max_mel_len = int(jnp.max(mel_len))                 # concrete (host-side) length
    # bucket mel axis up to a multiple of tile_m: unmasked (lane-dense) stores
    # and one compile per bucket instead of one per distinct length
    tmel_pad = max(tile_m, ((max_mel_len + tile_m - 1) // tile_m) * tile_m)
    n_tiles = tmel_pad // tile_m
    mel_mask = jnp.arange(max_mel_len)[None, :] >= mel_len[:, None]

    enc = encoder_outputs.astype(jnp.float32)
    # pack the three per-position scalar sequences into one input, pre-padded
    # for the K-tap conv
    seq = jnp.stack([p_targets.astype(jnp.float32),
                     e_targets.astype(jnp.float32),
                     d_pred], axis=-1)                              # (B, T, 3)
    seq_pad = jnp.pad(seq, ((0, 0), (pad, pad), (0, 0)))            # (B, Tpad, 3)
    # Gaussian centers from a wrapper-side cumsum (no in-kernel TxT matmul),
    # packed with the source mask, already in row orientation
    c = jnp.cumsum(d_pred, axis=-1) - 0.5 * d_pred                  # (B, T)
    aux = jnp.stack([src_mask.astype(jnp.float32), c], axis=1)      # (B, 2, T)

    # pack the three Conv1d(1 -> H) weights / biases into single arrays
    wcat = jnp.concatenate([params["wp"], params["we"], params["wd"]], axis=0)  # (3K, H)
    bcat = jnp.concatenate([params["bp"], params["be"], params["bd"]], axis=0)  # (3, H)

    tpad = T + 2 * pad

    def per_batch(shape):
        return pl.BlockSpec(shape, lambda b, j: (b, 0, 0))

    def shared(shape):
        return pl.BlockSpec(shape, lambda b, j: (0, 0))

    out_pad, attn_pad = pl.pallas_call(
        _gaussian_upsampling_kernel,
        grid=(B, n_tiles),
        in_specs=[
            per_batch((1, tpad, 3)),            # packed [p, e, d]
            per_batch((1, 2, T)),               # packed [mask ; centers]
            per_batch((1, T, H)),               # encoder outputs
            shared((3 * K, H)),                 # packed conv weights [p;e;d]
            shared((3, H)),                     # packed conv biases  [p;e;d]
            shared((1, H)), shared((1, 1)),     # range Linear(H -> 1)
        ],
        out_specs=[
            pl.BlockSpec((1, tile_m, H), lambda b, j: (b, j, 0)),
            pl.BlockSpec((1, T, tile_m), lambda b, j: (b, 0, j)),
        ],
        out_shape=[
            jax.ShapeDtypeStruct((B, tmel_pad, H), jnp.float32),
            jax.ShapeDtypeStruct((B, T, tmel_pad), jnp.float32),
        ],
        scratch_shapes=[
            pltpu.VMEM((T, H), jnp.bfloat16),   # x = p_emb + e_emb + enc
            pltpu.VMEM((1, T), jnp.float32),    # -1 / (2 s^2)
            pltpu.VMEM((1, T), jnp.float32),    # -log s - log sqrt(2*pi) (or -1e30)
        ],
        compiler_params=pltpu.CompilerParams(
            dimension_semantics=("parallel", "arbitrary"),
            vmem_limit_bytes=vmem_limit_bytes),
    )(seq_pad, aux, enc, wcat, bcat, params["wl"], params["bl"])

    out = out_pad[:, :max_mel_len, :]
    attn = attn_pad[:, :, :max_mel_len]
    return out, attn, mel_len, max_mel_len, mel_mask, d_pred


def reference_forward(enc, p, e, d, src_mask, params, Tmel):
    """Plain-JAX mirror of the PyTorch forward (d_target branch)."""
    K = params["wp"].shape[0]
    pad = (K - 1) // 2
    T = p.shape[1]

    def conv_embed(x, w, b):
        xp = jnp.pad(x, ((0, 0), (pad, pad)))
        cols = jnp.stack([xp[:, k:k + T] for k in range(K)], axis=-1)   # [B,T,K]
        return jnp.einsum("btk,kh->bth", cols, w, precision="highest") + b

    p_emb = conv_embed(p, params["wp"], params["bp"])
    e_emb = conv_embed(e, params["we"], params["be"])
    d_emb = conv_embed(d, params["wd"], params["bd"])
    s_input = p_emb + e_emb + d_emb + enc
    s_lin = jnp.einsum("bth,oh->bto", s_input, params["wl"],
                       precision="highest") + params["bl"]
    s = _softplus(s_lin)
    s = jnp.where(src_mask[..., None], 1e-8, s)
    c = (jnp.cumsum(d, axis=-1) - 0.5 * d)[..., None]
    t = jnp.arange(1, Tmel + 1, dtype=jnp.float32)[None, None, :]
    logp = -((t - c) ** 2) / (2.0 * s * s) - jnp.log(s) - LOG_SQRT_2PI
    w = jnp.exp(logp)
    w = jnp.where(src_mask[..., None], 0.0, w)
    attn = w / (jnp.sum(w, axis=1, keepdims=True) + 1e-8)
    out = jnp.einsum("btm,bth->bmh", attn, p_emb + e_emb + enc, precision="highest")
    return out, attn


if __name__ == "__main__":
    B, T, H, K = 2, 8, 32, 3
    key = jax.random.PRNGKey(0)
    ks = jax.random.split(key, 12)
    params = {
        "wp": 0.1 * jax.random.normal(ks[0], (K, H), jnp.float32),
        "bp": 0.1 * jax.random.normal(ks[1], (1, H), jnp.float32),
        "we": 0.1 * jax.random.normal(ks[2], (K, H), jnp.float32),
        "be": 0.1 * jax.random.normal(ks[3], (1, H), jnp.float32),
        "wd": 0.1 * jax.random.normal(ks[4], (K, H), jnp.float32),
        "bd": 0.1 * jax.random.normal(ks[5], (1, H), jnp.float32),
        "wl": (1.0 / math.sqrt(H)) * jax.random.normal(ks[6], (1, H), jnp.float32),
        "bl": jnp.zeros((1, 1), jnp.float32),
    }

    encoder_outputs = jax.random.normal(ks[7], (B, T, H), jnp.float32)
    src_len = jnp.array([8, 6], jnp.int32)
    src_mask = jnp.arange(T)[None, :] >= src_len[:, None]          # True = padded
    p_targets = jnp.where(src_mask, 0.0, jax.random.normal(ks[8], (B, T), jnp.float32))
    e_targets = jnp.where(src_mask, 0.0, jax.random.normal(ks[9], (B, T), jnp.float32))
    # total durations 150 / 100 -> mel axis spans two 128-frame tiles
    d_target = jnp.array([[20, 18, 25, 17, 22, 16, 19, 13],
                          [23, 17, 21, 16, 14,  9,  0,  0]], jnp.float32)

    out, attn, mel_len, max_mel_len, mel_mask, d_pred = gaussian_upsampling_forward(
        encoder_outputs, p_targets, e_targets, d_target, src_mask, params)
    jax.block_until_ready((out, attn))

    ref_out, ref_attn = reference_forward(encoder_outputs, p_targets, e_targets,
                                          d_target, src_mask, params, max_mel_len)

    assert out.shape == (B, max_mel_len, H)
    assert attn.shape == (B, T, max_mel_len)
    np.testing.assert_allclose(np.asarray(out), np.asarray(ref_out), rtol=2e-2, atol=2e-2)
    np.testing.assert_allclose(np.asarray(attn), np.asarray(ref_attn), rtol=2e-2, atol=2e-2)
    print("KERNEL_OK")
</pallas_src>

<mosaic_0001>
module attributes {stable_mosaic.version = 11 : i64} {
  func.func @_gaussian_upsampling_kernel(%arg0: i32, %arg1: i32, %arg2: memref<1x10x3xf32, #tpu.memory_space<vmem>>, %arg3: memref<1x2x8xf32, #tpu.memory_space<vmem>>, %arg4: memref<1x8x32xf32, #tpu.memory_space<vmem>>, %arg5: memref<9x32xf32, #tpu.memory_space<vmem>>, %arg6: memref<3x32xf32, #tpu.memory_space<vmem>>, %arg7: memref<1x32xf32, #tpu.memory_space<vmem>>, %arg8: memref<1x1xf32, #tpu.memory_space<vmem>>, %arg9: memref<1x128x32xf32, #tpu.memory_space<vmem>>, %arg10: memref<1x8x128xf32, #tpu.memory_space<vmem>>, %arg11: memref<8x32xbf16, #tpu.memory_space<vmem>>, %arg12: memref<1x8xf32, #tpu.memory_space<vmem>>, %arg13: memref<1x8xf32, #tpu.memory_space<vmem>>) attributes {dimension_semantics = [#tpu.dimension_semantics<parallel>, #tpu.dimension_semantics<arbitrary>], iteration_bounds = array<i64: 2, 2>, scalar_prefetch = 0 : i64, scratch_operands = 3 : i64, tpu.core_type = #tpu.core_type<tc>, window_params = [{transform_indices = @transform_0, window_bounds = array<i64: 1, 10, 3>}, {transform_indices = @transform_1, window_bounds = array<i64: 1, 2, 8>}, {transform_indices = @transform_2, window_bounds = array<i64: 1, 8, 32>}, {pipeline_mode = #tpu.pipeline_mode<synchronous>, transform_indices = @transform_3, window_bounds = array<i64: 9, 32>}, {pipeline_mode = #tpu.pipeline_mode<synchronous>, transform_indices = @transform_4, window_bounds = array<i64: 3, 32>}, {pipeline_mode = #tpu.pipeline_mode<synchronous>, transform_indices = @transform_5, window_bounds = array<i64: 1, 32>}, {pipeline_mode = #tpu.pipeline_mode<synchronous>, transform_indices = @transform_6, window_bounds = array<i64: 1, 1>}, {transform_indices = @transform_7, window_bounds = array<i64: 1, 128, 32>}, {transform_indices = @transform_8, window_bounds = array<i64: 1, 8, 128>}]} {
    %c0_i32 = arith.constant 0 : i32
    %0 = arith.cmpi eq, %arg1, %c0_i32 : i32
    %1 = arith.extui %0 : i1 to i32
    %c0_i32_0 = arith.constant 0 : i32
    %2 = arith.cmpi ne, %1, %c0_i32_0 : i32
    scf.if %2 {
      %c0_17 = arith.constant 0 : index
      %c0_18 = arith.constant 0 : index
      %c0_19 = arith.constant 0 : index
      %41 = vector.load %arg2[%c0_17, %c0_18, %c0_19] : memref<1x10x3xf32, #tpu.memory_space<vmem>>, vector<1x10x3xf32>
      %42 = vector.shape_cast %41 : vector<1x10x3xf32> to vector<10x3xf32>
      %c0_20 = arith.constant 0 : index
      %c0_21 = arith.constant 0 : index
      %c0_22 = arith.constant 0 : index
      %43 = vector.load %arg4[%c0_20, %c0_21, %c0_22] : memref<1x8x32xf32, #tpu.memory_space<vmem>>, vector<1x8x32xf32>
      %44 = vector.shape_cast %43 : vector<1x8x32xf32> to vector<8x32xf32>
      %c0_23 = arith.constant 0 : index
      %c0_24 = arith.constant 0 : index
      %c0_25 = arith.constant 0 : index
      %45 = vector.load %arg3[%c0_23, %c0_24, %c0_25] : memref<1x2x8xf32, #tpu.memory_space<vmem>>, vector<1x2x8xf32>
      %46 = vector.shape_cast %45 : vector<1x2x8xf32> to vector<2x8xf32>
      %47 = vector.extract_strided_slice %46 {offsets = [0, 0], sizes = [1, 8], strides = [1, 1]} : vector<2x8xf32> to vector<1x8xf32>
      %48 = vector.extract_strided_slice %42 {offsets = [0, 0], sizes = [10, 1], strides = [1, 1]} : vector<10x3xf32> to vector<10x1xf32>
      %cst_26 = arith.constant 0.000000e+00 : f32
      %49 = vector.broadcast %cst_26 : f32 to vector<8x32xf32>
      %50 = vector.extract_strided_slice %48 {offsets = [0, 0], sizes = [8, 1], strides = [1, 1]} : vector<10x1xf32> to vector<8x1xf32>
      %c0_27 = arith.constant 0 : index
      %c0_28 = arith.constant 0 : index
      %51 = vector.load %arg5[%c0_27, %c0_28] : memref<9x32xf32, #tpu.memory_space<vmem>>, vector<1x32xf32>
      %52 = vector.broadcast %50 : vector<8x1xf32> to vector<8x32xf32>
      %53 = vector.broadcast %51 : vector<1x32xf32> to vector<8x32xf32>
      %54 = arith.mulf %52, %53 : vector<8x32xf32>
      %55 = arith.addf %49, %54 : vector<8x32xf32>
      %56 = vector.extract_strided_slice %48 {offsets = [1, 0], sizes = [8, 1], strides = [1, 1]} : vector<10x1xf32> to vector<8x1xf32>
      %c1 = arith.constant 1 : index
      %c0_29 = arith.constant 0 : index
      %57 = vector.load %arg5[%c1, %c0_29] : memref<9x32xf32, #tpu.memory_space<vmem>>, vector<1x32xf32>
      %58 = vector.broadcast %56 : vector<8x1xf32> to vector<8x32xf32>
      %59 = vector.broadcast %57 : vector<1x32xf32> to vector<8x32xf32>
      %60 = arith.mulf %58, %59 : vector<8x32xf32>
      %61 = arith.addf %55, %60 : vector<8x32xf32>
      %62 = vector.extract_strided_slice %48 {offsets = [2, 0], sizes = [8, 1], strides = [1, 1]} : vector<10x1xf32> to vector<8x1xf32>
      %c2 = arith.constant 2 : index
      %c0_30 = arith.constant 0 : index
      %63 = vector.load %arg5[%c2, %c0_30] : memref<9x32xf32, #tpu.memory_space<vmem>>, vector<1x32xf32>
      %64 = vector.broadcast %62 : vector<8x1xf32> to vector<8x32xf32>
      %65 = vector.broadcast %63 : vector<1x32xf32> to vector<8x32xf32>
      %66 = arith.mulf %64, %65 : vector<8x32xf32>
      %67 = arith.addf %61, %66 : vector<8x32xf32>
      %c0_31 = arith.constant 0 : index
      %c0_32 = arith.constant 0 : index
      %68 = vector.load %arg6[%c0_31, %c0_32] : memref<3x32xf32, #tpu.memory_space<vmem>>, vector<1x32xf32>
      %69 = vector.broadcast %68 : vector<1x32xf32> to vector<8x32xf32>
      %70 = arith.addf %67, %69 : vector<8x32xf32>
      %71 = vector.extract_strided_slice %42 {offsets = [0, 1], sizes = [10, 1], strides = [1, 1]} : vector<10x3xf32> to vector<10x1xf32>
      %cst_33 = arith.constant 0.000000e+00 : f32
      %72 = vector.broadcast %cst_33 : f32 to vector<8x32xf32>
      %73 = vector.extract_strided_slice %71 {offsets = [0, 0], sizes = [8, 1], strides = [1, 1]} : vector<10x1xf32> to vector<8x1xf32>
      %c3 = arith.constant 3 : index
      %c0_34 = arith.constant 0 : index
      %74 = vector.load %arg5[%c3, %c0_34] : memref<9x32xf32, #tpu.memory_space<vmem>>, vector<1x32xf32>
      %75 = vector.broadcast %73 : vector<8x1xf32> to vector<8x32xf32>
      %76 = vector.broadcast %74 : vector<1x32xf32> to vector<8x32xf32>
      %77 = arith.mulf %75, %76 : vector<8x32xf32>
      %78 = arith.addf %72, %77 : vector<8x32xf32>
      %79 = vector.extract_strided_slice %71 {offsets = [1, 0], sizes = [8, 1], strides = [1, 1]} : vector<10x1xf32> to vector<8x1xf32>
      %c4 = arith.constant 4 : index
      %c0_35 = arith.constant 0 : index
      %80 = vector.load %arg5[%c4, %c0_35] : memref<9x32xf32, #tpu.memory_space<vmem>>, vector<1x32xf32>
      %81 = vector.broadcast %79 : vector<8x1xf32> to vector<8x32xf32>
      %82 = vector.broadcast %80 : vector<1x32xf32> to vector<8x32xf32>
      %83 = arith.mulf %81, %82 : vector<8x32xf32>
      %84 = arith.addf %78, %83 : vector<8x32xf32>
      %85 = vector.extract_strided_slice %71 {offsets = [2, 0], sizes = [8, 1], strides = [1, 1]} : vector<10x1xf32> to vector<8x1xf32>
      %c5 = arith.constant 5 : index
      %c0_36 = arith.constant 0 : index
      %86 = vector.load %arg5[%c5, %c0_36] : memref<9x32xf32, #tpu.memory_space<vmem>>, vector<1x32xf32>
      %87 = vector.broadcast %85 : vector<8x1xf32> to vector<8x32xf32>
      %88 = vector.broadcast %86 : vector<1x32xf32> to vector<8x32xf32>
      %89 = arith.mulf %87, %88 : vector<8x32xf32>
      %90 = arith.addf %84, %89 : vector<8x32xf32>
      %c1_37 = arith.constant 1 : index
      %c0_38 = arith.constant 0 : index
      %91 = vector.load %arg6[%c1_37, %c0_38] : memref<3x32xf32, #tpu.memory_space<vmem>>, vector<1x32xf32>
      %92 = vector.broadcast %91 : vector<1x32xf32> to vector<8x32xf32>
      %93 = arith.addf %90, %92 : vector<8x32xf32>
      %94 = vector.extract_strided_slice %42 {offsets = [0, 2], sizes = [10, 1], strides = [1, 1]} : vector<10x3xf32> to vector<10x1xf32>
      %cst_39 = arith.constant 0.000000e+00 : f32
      %95 = vector.broadcast %cst_39 : f32 to vector<8x32xf32>
      %96 = vector.extract_strided_slice %94 {offsets = [0, 0], sizes = [8, 1], strides = [1, 1]} : vector<10x1xf32> to vector<8x1xf32>
      %c6 = arith.constant 6 : index
      %c0_40 = arith.constant 0 : index
      %97 = vector.load %arg5[%c6, %c0_40] : memref<9x32xf32, #tpu.memory_space<vmem>>, vector<1x32xf32>
      %98 = vector.broadcast %96 : vector<8x1xf32> to vector<8x32xf32>
      %99 = vector.broadcast %97 : vector<1x32xf32> to vector<8x32xf32>
      %100 = arith.mulf %98, %99 : vector<8x32xf32>
      %101 = arith.addf %95, %100 : vector<8x32xf32>
      %102 = vector.extract_strided_slice %94 {offsets = [1, 0], sizes = [8, 1], strides = [1, 1]} : vector<10x1xf32> to vector<8x1xf32>
      %c7 = arith.constant 7 : index
      %c0_41 = arith.constant 0 : index
      %103 = vector.load %arg5[%c7, %c0_41] : memref<9x32xf32, #tpu.memory_space<vmem>>, vector<1x32xf32>
      %104 = vector.broadcast %102 : vector<8x1xf32> to vector<8x32xf32>
      %105 = vector.broadcast %103 : vector<1x32xf32> to vector<8x32xf32>
      %106 = arith.mulf %104, %105 : vector<8x32xf32>
      %107 = arith.addf %101, %106 : vector<8x32xf32>
      %108 = vector.extract_strided_slice %94 {offsets = [2, 0], sizes = [8, 1], strides = [1, 1]} : vector<10x1xf32> to vector<8x1xf32>
      %c8 = arith.constant 8 : index
      %c0_42 = arith.constant 0 : index
      %109 = vector.load %arg5[%c8, %c0_42] : memref<9x32xf32, #tpu.memory_space<vmem>>, vector<1x32xf32>
      %110 = vector.broadcast %108 : vector<8x1xf32> to vector<8x32xf32>
      %111 = vector.broadcast %109 : vector<1x32xf32> to vector<8x32xf32>
      %112 = arith.mulf %110, %111 : vector<8x32xf32>
      %113 = arith.addf %107, %112 : vector<8x32xf32>
      %c2_43 = arith.constant 2 : index
      %c0_44 = arith.constant 0 : index
      %114 = vector.load %arg6[%c2_43, %c0_44] : memref<3x32xf32, #tpu.memory_space<vmem>>, vector<1x32xf32>
      %115 = vector.broadcast %114 : vector<1x32xf32> to vector<8x32xf32>
      %116 = arith.addf %113, %115 : vector<8x32xf32>
      %117 = arith.addf %70, %93 : vector<8x32xf32>
      %118 = arith.addf %117, %44 : vector<8x32xf32>
      %119 = arith.truncf %118 : vector<8x32xf32> to vector<8x32xbf16>
      %c0_45 = arith.constant 0 : index
      %c0_46 = arith.constant 0 : index
      %120 = vector.load %arg11[%c0_45, %c0_46] : memref<8x32xbf16, #tpu.memory_space<vmem>>, vector<8x32xbf16>
      tpu.vector_store %arg11[%c0_45, %c0_46], %119 {strides = array<i32>} : memref<8x32xbf16, #tpu.memory_space<vmem>>, vector<8x32xbf16>,
      %121 = arith.addf %118, %116 : vector<8x32xf32>
      %c0_47 = arith.constant 0 : index
      %c0_48 = arith.constant 0 : index
      %122 = vector.load %arg7[%c0_47, %c0_48] : memref<1x32xf32, #tpu.memory_space<vmem>>, vector<1x32xf32>
      %cst_49 = arith.constant dense<0.000000e+00> : vector<1x8xf32>
      %123 = tpu.matmul %122, %121, %cst_49 {dimension_numbers = #tpu.dot_dimension_numbers<[1], [1], [0], [0], [0, 0, 1, 0], [], []>} : vector<1x32xf32>, vector<8x32xf32>, vector<1x8xf32> -> vector<1x8xf32>
      %c0_50 = arith.constant 0 : index
      %c0_51 = arith.constant 0 : index
      %124 = vector.load %arg8[%c0_50, %c0_51] : memref<1x1xf32, #tpu.memory_space<vmem>>, vector<1x1xf32>
      %125 = vector.broadcast %124 : vector<1x1xf32> to vector<1x8xf32>
      %126 = arith.addf %123, %125 : vector<1x8xf32>
      %cst_52 = arith.constant 2.000000e+01 : f32
      %127 = vector.broadcast %cst_52 : f32 to vector<1x8xf32>
      %128 = arith.cmpf ogt, %126, %127 : vector<1x8xf32>
      %cst_53 = arith.constant 2.000000e+01 : f32
      %129 = vector.broadcast %cst_53 : f32 to vector<1x8xf32>
      %130 = arith.minimumf %126, %129 : vector<1x8xf32>
      %131 = math.exp %130 : vector<1x8xf32>
      %132 = math.log1p %131 : vector<1x8xf32>
      %133 = arith.select %128, %126, %132 : vector<1x8xi1>, vector<1x8xf32>
      %cst_54 = arith.constant 0.000000e+00 : f32
      %134 = vector.broadcast %cst_54 : f32 to vector<1x8xf32>
      %135 = arith.cmpf ogt, %47, %134 : vector<1x8xf32>
      %cst_55 = arith.constant 9.99999993E-9 : f32
      %136 = vector.broadcast %cst_55 : f32 to vector<1x8xf32>
      %137 = arith.select %135, %136, %133 : vector<1x8xi1>, vector<1x8xf32>
      %cst_56 = arith.constant 2.000000e+00 : f32
      %138 = vector.broadcast %cst_56 : f32 to vector<1x8xf32>
      %139 = arith.mulf %138, %137 : vector<1x8xf32>
      %140 = arith.mulf %139, %137 : vector<1x8xf32>
      %cst_57 = arith.constant -1.000000e+00 : f32
      %141 = vector.broadcast %cst_57 : f32 to vector<1x8xf32>
      %142 = arith.divf %141, %140 : vector<1x8xf32>
      %c0_58 = arith.constant 0 : index
      %c0_59 = arith.constant 0 : index
      %143 = vector.load %arg12[%c0_58, %c0_59] : memref<1x8xf32, #tpu.memory_space<vmem>>, vector<1x8xf32>
      tpu.vector_store %arg12[%c0_58, %c0_59], %142 {strides = array<i32>} : memref<1x8xf32, #tpu.memory_space<vmem>>, vector<1x8xf32>,
      %cst_60 = arith.constant 0.000000e+00 : f32
      %144 = vector.broadcast %cst_60 : f32 to vector<1x8xf32>
      %145 = arith.cmpf ogt, %47, %144 : vector<1x8xf32>
      %146 = math.log %137 : vector<1x8xf32>
      %cst_61 = arith.constant 0.000000e+00 : f32
      %147 = vector.broadcast %cst_61 : f32 to vector<1x8xf32>
      %148 = arith.subf %147, %146 : vector<1x8xf32>
      %cst_62 = arith.constant 0.918938517 : f32
      %149 = vector.broadcast %cst_62 : f32 to vector<1x8xf32>
      %150 = arith.subf %148, %149 : vector<1x8xf32>
      %cst_63 = arith.constant -1.000000e+30 : f32
      %151 = vector.broadcast %cst_63 : f32 to vector<1x8xf32>
      %152 = arith.select %145, %151, %150 : vector<1x8xi1>, vector<1x8xf32>
      %c0_64 = arith.constant 0 : index
      %c0_65 = arith.constant 0 : index
      %153 = vector.load %arg13[%c0_64, %c0_65] : memref<1x8xf32, #tpu.memory_space<vmem>>, vector<1x8xf32>
      tpu.vector_store %arg13[%c0_64, %c0_65], %152 {strides = array<i32>} : memref<1x8xf32, #tpu.memory_space<vmem>>, vector<1x8xf32>,
    } else {
    }
    %c0 = arith.constant 0 : index
    %c0_1 = arith.constant 0 : index
    %c0_2 = arith.constant 0 : index
    %3 = vector.load %arg3[%c0, %c0_1, %c0_2] : memref<1x2x8xf32, #tpu.memory_space<vmem>>, vector<1x2x8xf32>
    %4 = vector.shape_cast %3 : vector<1x2x8xf32> to vector<2x8xf32>
    %5 = vector.extract_strided_slice %4 {offsets = [1, 0], sizes = [1, 8], strides = [1, 1]} : vector<2x8xf32> to vector<1x8xf32>
    %6 = tpu.iota {dimensions = array<i32: 0>} : vector<128x1xi32>
    %7 = arith.sitofp %6 : vector<128x1xi32> to vector<128x1xf32>
    %c128_i32 = arith.constant 128 : i32
    %8 = arith.muli %arg1, %c128_i32 : i32
    %c1_i32 = arith.constant 1 : i32
    %9 = arith.addi %8, %c1_i32 : i32
    %10 = arith.sitofp %9 : i32 to f32
    %11 = vector.broadcast %10 : f32 to vector<128x1xf32>
    %12 = arith.addf %7, %11 : vector<128x1xf32>
    %13 = vector.broadcast %12 : vector<128x1xf32> to vector<128x8xf32>
    %14 = vector.broadcast %5 : vector<1x8xf32> to vector<128x8xf32>
    %15 = arith.subf %13, %14 : vector<128x8xf32>
    %16 = arith.mulf %15, %15 : vector<128x8xf32>
    %c0_3 = arith.constant 0 : index
    %c0_4 = arith.constant 0 : index
    %17 = vector.load %arg12[%c0_3, %c0_4] : memref<1x8xf32, #tpu.memory_space<vmem>>, vector<1x8xf32>
    %18 = vector.broadcast %17 : vector<1x8xf32> to vector<128x8xf32>
    %19 = arith.mulf %16, %18 : vector<128x8xf32>
    %c0_5 = arith.constant 0 : index
    %c0_6 = arith.constant 0 : index
    %20 = vector.load %arg13[%c0_5, %c0_6] : memref<1x8xf32, #tpu.memory_space<vmem>>, vector<1x8xf32>
    %21 = vector.broadcast %20 : vector<1x8xf32> to vector<128x8xf32>
    %22 = arith.addf %19, %21 : vector<128x8xf32>
    %23 = math.exp %22 : vector<128x8xf32>
    %cst = arith.constant dense<0.000000e+00> : vector<128xf32>
    %24 = vector.multi_reduction <add>, %23, %cst [1] : vector<128x8xf32> to vector<128xf32>
    %25 = vector.shape_cast %24 : vector<128xf32> to vector<128x1xf32>
    %cst_7 = arith.constant 9.99999993E-9 : f32
    %26 = vector.broadcast %cst_7 : f32 to vector<128x1xf32>
    %27 = arith.addf %25, %26 : vector<128x1xf32>
    %28 = tpu.reciprocal %27 {approx = true} : vector<128x1xf32> -> vector<128x1xf32>
    %29 = vector.broadcast %28 : vector<128x1xf32> to vector<128x8xf32>
    %30 = arith.mulf %23, %29 : vector<128x8xf32>
    %31 = arith.truncf %30 : vector<128x8xf32> to vector<128x8xbf16>
    %c0_8 = arith.constant 0 : index
    %c0_9 = arith.constant 0 : index
    %32 = vector.load %arg11[%c0_8, %c0_9] : memref<8x32xbf16, #tpu.memory_space<vmem>>, vector<8x32xbf16>
    %cst_10 = arith.constant dense<0.000000e+00> : vector<128x32xf32>
    %33 = tpu.matmul %31, %32, %cst_10 {dimension_numbers = #tpu.dot_dimension_numbers<[1], [0], [0], [1], [0, 0, 1, 1], [], []>} : vector<128x8xbf16>, vector<8x32xbf16>, vector<128x32xf32> -> vector<128x32xf32>
    %c0_11 = arith.constant 0 : index
    %c0_12 = arith.constant 0 : index
    %c0_13 = arith.constant 0 : index
    %34 = vector.load %arg9[%c0_11, %c0_12, %c0_13] : memref<1x128x32xf32, #tpu.memory_space<vmem>>, vector<1x128x32xf32>
    %35 = vector.shape_cast %34 : vector<1x128x32xf32> to vector<128x32xf32>
    %36 = vector.shape_cast %33 : vector<128x32xf32> to vector<1x128x32xf32>
    tpu.vector_store %arg9[%c0_11, %c0_12, %c0_13], %36 {strides = array<i32>} : memref<1x128x32xf32, #tpu.memory_space<vmem>>, vector<1x128x32xf32>,
    %37 = tpu.transpose %30, [1, 0] : vector<128x8xf32> -> vector<8x128xf32>
    %c0_14 = arith.constant 0 : index
    %c0_15 = arith.constant 0 : index
    %c0_16 = arith.constant 0 : index
    %38 = vector.load %arg10[%c0_14, %c0_15, %c0_16] : memref<1x8x128xf32, #tpu.memory_space<vmem>>, vector<1x8x128xf32>
    %39 = vector.shape_cast %38 : vector<1x8x128xf32> to vector<8x128xf32>
    %40 = vector.shape_cast %37 : vector<8x128xf32> to vector<1x8x128xf32>
    tpu.vector_store %arg10[%c0_14, %c0_15, %c0_16], %40 {strides = array<i32>} : memref<1x8x128xf32, #tpu.memory_space<vmem>>, vector<1x8x128xf32>,
    return
  }
  func.func @transform_0(%arg0: i32, %arg1: i32) -> (i32, i32, i32) {
    %c0_i32 = arith.constant 0 : i32
    %c0_i32_0 = arith.constant 0 : i32
    %c0_i32_1 = arith.constant 0 : i32
    return %arg0, %c0_i32, %c0_i32_0 : i32, i32, i32
  }
  func.func @transform_1(%arg0: i32, %arg1: i32) -> (i32, i32, i32) {
    %c0_i32 = arith.constant 0 : i32
    %c0_i32_0 = arith.constant 0 : i32
    %c0_i32_1 = arith.constant 0 : i32
    return %arg0, %c0_i32, %c0_i32_0 : i32, i32, i32
  }
  func.func @transform_2(%arg0: i32, %arg1: i32) -> (i32, i32, i32) {
    %c0_i32 = arith.constant 0 : i32
    %c0_i32_0 = arith.constant 0 : i32
    %c0_i32_1 = arith.constant 0 : i32
    return %arg0, %c0_i32, %c0_i32_0 : i32, i32, i32
  }
  func.func @transform_3(%arg0: i32, %arg1: i32) -> (i32, i32) {
    %c0_i32 = arith.constant 0 : i32
    %c0_i32_0 = arith.constant 0 : i32
    %c0_i32_1 = arith.constant 0 : i32
    return %c0_i32, %c0_i32_0 : i32, i32
  }
  func.func @transform_4(%arg0: i32, %arg1: i32) -> (i32, i32) {
    %c0_i32 = arith.constant 0 : i32
    %c0_i32_0 = arith.constant 0 : i32
    %c0_i32_1 = arith.constant 0 : i32
    return %c0_i32, %c0_i32_0 : i32, i32
  }
  func.func @transform_5(%arg0: i32, %arg1: i32) -> (i32, i32) {
    %c0_i32 = arith.constant 0 : i32
    %c0_i32_0 = arith.constant 0 : i32
    %c0_i32_1 = arith.constant 0 : i32
    return %c0_i32, %c0_i32_0 : i32, i32
  }
  func.func @transform_6(%arg0: i32, %arg1: i32) -> (i32, i32) {
    %c0_i32 = arith.constant 0 : i32
    %c0_i32_0 = arith.constant 0 : i32
    %c0_i32_1 = arith.constant 0 : i32
    return %c0_i32, %c0_i32_0 : i32, i32
  }
  func.func @transform_7(%arg0: i32, %arg1: i32) -> (i32, i32, i32) {
    %c0_i32 = arith.constant 0 : i32
    %c0_i32_0 = arith.constant 0 : i32
    return %arg0, %arg1, %c0_i32 : i32, i32, i32
  }
  func.func @transform_8(%arg0: i32, %arg1: i32) -> (i32, i32, i32) {
    %c0_i32 = arith.constant 0 : i32
    %c0_i32_0 = arith.constant 0 : i32
    return %arg0, %c0_i32, %arg1 : i32, i32, i32
  }
}

</mosaic_0001>

<bundles_post_ra>
// kernel: tpu_custom_call.1
= control target key start
LH: loop header
LB: loop body
LE: loop exit
PB: predicated region body
PF: predicated region fallthrough
CT: control target
= control target key end

     0   :  { %s2092_s0 = inlined_call_operand.vmem [shape: f32[2,10,3], index: 0, kind: input, shape index: {}]   ;;  %s2093_s1 = inlined_call_operand.vmem [shape: f32[2,2,8], index: 1, kind: input, shape index: {}]   ;;  %s2094_s2 = inlined_call_operand.vmem [shape: f32[2,8,32], index: 2, kind: input, shape index: {}]   ;;  %s2095_s3 = inlined_call_operand.vmem [shape: f32[9,32], index: 3, kind: input, shape index: {}]   ;;  %s2096_s4 = inlined_call_operand.vmem [shape: f32[3,32], index: 4, kind: input, shape index: {}]   ;;  %s2097_s5 = inlined_call_operand.vmem [shape: f32[1,32], index: 5, kind: input, shape index: {}]   ;;  %s2098_s6 = inlined_call_operand.<no memory space> [shape: f32[1,1], index: 6, kind: input, shape index: {}]   ;;  %s2099_s7 = inlined_call_operand.vmem [shape: f32[2,256,32], index: 7, kind: output, shape index: {0}]   ;;  %s2100_s8 = inlined_call_operand.hbm [shape: f32[2,8,256], index: 8, kind: output, shape index: {1}]  }
   0x1   :  { %2114 = sst [smem:[#allocation19_spill]] %s2100_s8  ;;  %v14_v0 = vstv %s2098_s6 }
   0x2   :  { %15 = vst [vmem:[#allocation5] sm:$0x1] %v14_v0 }
   0x3   :  { %16 = vsyncpa [#allocation7], 0 }
   0x4   :  { %18 = vsyncpa [#allocation7 + $0x1], 0  ;;  %s1659_s29 = smov 0   ;;  %s1661_s30 = smov 0  }
   0x5   :  { %s1663_s9 = smov 0   ;;  %s1665_s10 = smov 0  }
   0x6   :  { %s1667_s11 = smov 0   ;;  %s1669_s12 = smov 0  }
   0x7   :  { %s1671_s13 = smov 0   ;;  %s1673_s14 = smov 0  }
   0x8 LB: > { %2115 = sst [smem:[#allocation9_spill]] %s1575_s29  ;;  %s1271_s6 = sadd.s32 4294967295, %s1603_s14   ;;  %s1603_s14 = sphi %s1673_s14, %s24_s14   ;;  %s1599_s13 = sphi %s1671_s13, %s2139_s13   ;;  %s1595_s12 = sphi %s1669_s12, %s2138_s12   ;;  %s1591_s11 = sphi %s1667_s11, %s2137_s11   ;;  %s1587_s10 = sphi %s1665_s10, %s2136_s10   ;;  %s1583_s9 = sphi %s1663_s9, %s2135_s9   ;;  %s1579_s30 = sphi %s1661_s30, %s2141_s30   ;;  %s1575_s29 = sphi %s1659_s29, %s2140_s29  }
   0x9   : > { %2116 = sst [smem:[#allocation10_spill]] %s1583_s9  ;;  %s1272_s15 = sadd.s32 4294967294, %s1603_s14  }
   0xa   : > { %2117 = sst [smem:[#allocation11_spill]] %s1595_s12  ;;  %s33_s16 = sadd.s32 1, %s1595_s12 }
   0xb   : > { %2118 = sst [smem:[#allocation12_spill]] %s1599_s13  ;;  %p34_p0 = scmp.ge.s32.totalorder %s33_s16, 2 }
   0xc   : > { %2119 = sst [smem:[#allocation13_spill]] %s1603_s14  ;;  %s36_s17 = sadd.s32 1, %s1599_s13 }
   0xd   : > { %p245_p1 = scmp.ne.s32.totalorder %s1583_s9, %s1579_s30  ;;  %p246_p2 = scmp.eq.s32.totalorder %s1271_s6, 3 }
   0xe   : > { %s2143_s16 = smov (%p34_p0, %s33_s16), 0  ;;  %s2145_s17 = smov (!%p34_p0, %s36_s17), %s1599_s13 }
   0xf   : > { %2120 = sst [smem:[#allocation14_spill]] %s2143_s16  ;;  %s231_s18 = ssub.s32 %s1595_s12, %s2143_s16 }
  0x10   : > { %p1710_p3 = por %p246_p2, %p245_p1  ;;  %p38_p4 = scmp.ge.s32.totalorder %s2145_s17, 2 }
  0x11   : > { %p251_p5 = scmp.ne.s32.totalorder %s1579_s30, %s1575_s29  ;;  %p252_p6 = scmp.eq.s32.totalorder %s1272_s15, 3 }
  0x12   : > { %s2121_s19 = scalar_select %p1710_p3, 1, 0 }
  0x13   : > { %p1275_p7 = scmp.ge.s32.totalorder %s1603_s14, 1  ;;  %s2147_s17 = smov (%p38_p4, %s2145_s17), 0 }
  0x14   : > { %2122 = sst [smem:[#allocation15_spill]] %s2121_s19  ;;  %p1719_p8 = por %p252_p6, %p251_p5 }
  0x15   : > { %2123 = sst [smem:[#allocation16_spill]] %s2147_s17  ;;  %p304_p9 = scmp.lt.s32.totalorder %s1603_s14, 5 }
  0x16   : > { %s2124_s20 = scalar_select %p1719_p8, 1, 0 }
  0x17   : > { %s230_s21 = ssub.s32 %s1599_s13, %s2147_s17  ;;  %s235_s22 = sadd.s32 1, %s1583_s9 }
  0x18   : > { %2125 = sst [smem:[#allocation17_spill]] %s2124_s20  ;;  %s232_s23 = sor.u32 %s231_s18, %s230_s21 }
  0x19   : > { %p305_p10 = pnand %p1275_p7, %p304_p9  ;;  %p233_p11 = scmp.eq.s32.totalorder %s232_s23, 0 }
  0x1a   : > { %s2105_s25 = sand.u32 (!%p305_p10), 1, %s1579_s30   ;;  %p355_p12 = scmp.lt.s32.totalorder (!%p305_p10), %s1591_s11, 1 }
  0x1b   : > { %s1728_s24 = scalar_select %p233_p11, %s1583_s9, %s235_s22  }
  0x1c   : > { %308 = sbr.rel (%p305_p10) target bundleno = 898 (0x382), region = 48  ;;  %s1734_s26 = sshll.u32 (!%p305_p10), %s2105_s25, 3 }
  0x1d   : > { %2126 = sst [smem:[#allocation18_spill]] %s1728_s24  ;;  %s1281_s27 = sshll.u32 (!%p305_p10), %s1587_s10, 4 }
  0x1e   : > { %p371_p13 = scmp.lt.s32.totalorder (!%p305_p10), %s1281_s27, 31  ;;  %p1284_p0 = scmp.ne.s32.totalorder (!%p305_p10), %s1587_s10, 0 }
  0x23   : > { %s356_s28 = scalar_select %p355_p12, %s1591_s11, 1 }
  0x24   : > { %s2149_s27 = smov (!%p371_p13, %s1281_s27), 31  ;;  %382 = sbr.rel (%p1284_p0) target bundleno = 460 (0x1cc), region = 52 }
  0x25   : > { %s1316_s6 = sshll.u32 %s356_s28, 4  ;;  %s1279_s15 = sshll.u32 %s356_s28, 1  ;;  %v1605_v2 = vmov (!%p1284_p0), 1   ;;  %v1606_v3 = vmov (!%p1284_p0), 0   ;;  %v1607_v5 = vmov (!%p1284_p0), 2   ;;  %v1608_v6 = vmov (!%p1284_p0), 0.0  }
  0x26   : > { %s359_s22 = scalar_lea.vmem %s2092_s0, %s1316_s6  ;;  %s1744_s16 = scalar_lea.vmem %s2093_s1, %s1279_s15  ;;  %1432 = vset.pattern.permute.xlu1 (!%p1284_p0), %v1605_v2  ;;  %1431 = vset.pattern.permute.xlu0 (!%p1284_p0), %v1606_v3  ;;  %vm1609_vm0 = vmmov (!%p1284_p0), 0   ;;  %v545_v7 = vld [vmem:[#allocation5] sm:$0x1] (!%p1284_p0)  ;;  %v1290_v8 = vld [vmem:[%s2095_s3 + $0x4] ss:$0 sm:$0xff] (!%p1284_p0)  ;;  %vm413_vm1 = vcmask (!%p1284_p0), 1046528  }
  0x27   : > { %s1280_s13 = sshll.u32 %s356_s28, 3  ;;  %s1282_s12 = sshll.u32 %s356_s28, 5  ;;  %v383_v1 = vld [vmem:[%s359_s22] sm:$0xff] (!%p1284_p0)  ;;  %v384_v4 = vld [vmem:[%s359_s22 + $0x8] sm:$0x3] (!%p1284_p0)  ;;  %1328 = vmatprep.subr.mxu0 (!%p1284_p0), %v1608_v6  ;;  %1330 = vmatprep.mubr.msk.f32.mxu0 (!%p1284_p0), %vm1609_vm0, %v1608_v6  ;;  %vm428_vm2 = vcmask (!%p1284_p0), 1045504  }
  0x28   : > { %s1749_s9 = scalar_lea.vmem %s2094_s2, %s1280_s13  ;;  %s374_s20 = sadd.s32 %s1282_s12, %s2149_s27  ;;  %442 = vperm.xlu1 (!%p1284_p0), %1432, %v383_v1   ;;  %390 = vperm.xlu0 (!%p1284_p0), %1431, %v383_v1   ;;  %v1286_v9 = vld [vmem:[%s2095_s3 + $0x1] ss:$0 sm:$0xff] (!%p1284_p0)  ;;  %v1291_v12 = vld [vmem:[%s2095_s3 + $0x5] ss:$0 sm:$0xff] (!%p1284_p0)  ;;  %v1287_v13 = vld [vmem:[%s2095_s3 + $0x2] ss:$0 sm:$0xff] (!%p1284_p0) }
  0x29   : > { %s1283_s29 = sshll.u32 %s374_s20, 3  ;;  %s354_s6 = scalar_lea.vmem [#allocation6], %s1734_s26  ;;  %v1289_v20 = vld [vmem:[%s2095_s3 + $0x3] ss:$0 sm:$0xff] (!%p1284_p0)  ;;  %v1285_v21 = vld [vmem:[%s2095_s3] ss:$0 sm:$0xff] (!%p1284_p0) }
  0x2a   : > { %s1754_s19 = scalar_lea.vmem %s2099_s7, %s1283_s29  ;;  %v1294_v28 = vld [vmem:[%s2095_s3 + $0x7] ss:$0 sm:$0xff] (!%p1284_p0)  ;;  %v1295_v33 = vld [vmem:[%s2095_s3 + $0x8] ss:$0 sm:$0xff] (!%p1284_p0)  ;;  %v1292_v46 = vld [vmem:[%s2096_s4 + $0x1] ss:$0 sm:$0xff] (!%p1284_p0) }
  0x2b   : > { %v1288_v48 = vld [vmem:[%s2096_s4] ss:$0 sm:$0xff]  ;;  %v1293_v50 = vld [vmem:[%s2095_s3 + $0x6] ss:$0 sm:$0xff]  ;;  %vm541_vm3 = vcmask 257024   ;;  %vm555_vm4 = vcmask 261120  }
  0x2c   : > { %453 = vperm.xlu1 %1432, %v384_v4   ;;  %402 = vperm.xlu0 %1431, %v384_v4   ;;  %v385_v63 = vld [vmem:[%s1749_s9] sm:$0xff]  ;;  %vm652_vm8 = vcmask 57344  }
  0x30   : > { %1434 = vset.pattern.permute.xlu1 %v1607_v5  ;;  %1433 = vset.pattern.permute.xlu0 %v1607_v5 }
  0x31   : > { %502 = vperm.xlu1 %1434, %v384_v4   ;;  %491 = vperm.xlu0 %1433, %v383_v1  }
  0x35   : > { %1435 = vset.pattern.permute.xlu1 %v1606_v3  ;;  %1436 = vset.pattern.permute.xlu0 %v1606_v3  ;;  %v1296_v3 = vld [vmem:[%s2096_s4 + $0x2] ss:$0 sm:$0xff] }
  0x36   : > { %548 = vperm.xlu1 %1435, %v545_v7  }
  0xa7   : > { %v443_v10 = vpop.permute.xlu1 %442  ;;  %v391_v11 = vpop.permute.xlu0 %390 }
  0xa8   : > { %v460_v14 = vmul.f32 %v1290_v8, %v443_v10  ;;  %v409_v15 = vmul.f32 %v1286_v9, %v391_v11  ;;  %v474_v16 = vmul.f32 %v1291_v12, %v443_v10  ;;  %v424_v18 = vmul.f32 %v1287_v13, %v391_v11 }
  0xa9   : > { %v449_v34 = vmul.f32 %v1289_v20, %v443_v10  ;;  %v397_v35 = vmul.f32 %v1285_v21, %v391_v11  ;;  %v551_v10 = vlaneseq }
  0xaa   : > { %v464_v26 = vrot.slane %v460_v14, 1  ;;  %v414_v27 = vrot.slane %v409_v15, 1  ;;  %v478_v36 = vrot.slane %v474_v16, 2  ;;  %v429_v38 = vrot.slane %v424_v18, 2 }
  0xab   : > { %v454_v17 = vpop.permute.xlu1 %453  ;;  %v403_v19 = vpop.permute.xlu0 %402  ;;  %v552_v11 = vshrl.u32 %v551_v10, 7 }
  0xac   : > { %v461_v22 = vmul.f32 %v1290_v8, %v454_v17  ;;  %v475_v23 = vmul.f32 %v1291_v12, %v454_v17  ;;  %v410_v24 = vmul.f32 %v1286_v9, %v403_v19  ;;  %v425_v25 = vmul.f32 %v1287_v13, %v403_v19  ;;  %v544_v9 = vld [vmem:[%s2097_s5] sm:$0x1] }
  0xad   : > { %v553_v12 = vsub.s32 0, %v552_v11 }
  0xae   : > { %v465_v29 = vrot.slane %v461_v22, 1  ;;  %v479_v30 = vrot.slane %v475_v23, 2  ;;  %v415_v31 = vrot.slane %v410_v24, 1  ;;  %v430_v32 = vrot.slane %v425_v25, 2  ;;  %v386_v25 = vld [vmem:[%s1744_s16] sm:$0x3] }
  0xaf   : > { %vm646_vm6 = vcmp.gt.f32.partialorder %v386_v25, 0.0 }
  0xb0   : > { %v466_v37 = vsel %vm413_vm1, %v464_v26, %v465_v29  ;;  %v416_v39 = vsel %vm413_vm1, %v414_v27, %v415_v31  ;;  %v503_v40 = vpop.permute.xlu1 %502  ;;  %v492_v41 = vpop.permute.xlu0 %491  ;;  %v480_v47 = vsel %vm428_vm2, %v478_v36, %v479_v30  ;;  %v431_v49 = vsel %vm428_vm2, %v429_v38, %v430_v32 }
  0xb1   : > { %v468_v42 = vadd.f32 %v466_v37, %v449_v34  ;;  %v418_v43 = vadd.f32 %v416_v39, %v397_v35  ;;  %v510_v44 = vmul.f32 %v1294_v28, %v503_v40  ;;  %v524_v45 = vmul.f32 %v1295_v33, %v503_v40 }
  0xb2   : > { %v509_v51 = vmul.f32 %v1294_v28, %v492_v41  ;;  %v523_v52 = vmul.f32 %v1295_v33, %v492_v41  ;;  %v498_v61 = vmul.f32 %v1293_v50, %v492_v41 }
  0xb3   : > { %v482_v53 = vadd.f32 %v480_v47, %v468_v42  ;;  %v433_v54 = vadd.f32 %v431_v49, %v418_v43  ;;  %v514_v55 = vrot.slane %v510_v44, 1  ;;  %v528_v56 = vrot.slane %v524_v45, 2 }
  0xb4   : > { %v513_v57 = vrot.slane %v509_v51, 1  ;;  %v527_v58 = vrot.slane %v523_v52, 2 }
  0xb5   : > { %v488_v59 = vadd.f32 %v1292_v46, %v482_v53  ;;  %v439_v60 = vadd.f32 %v1288_v48, %v433_v54  ;;  %v549_v13 = vpop.permute.xlu1 %548 }
  0xb6   : > { %v515_v62 = vsel %vm413_vm1, %v513_v57, %v514_v55  ;;  %v529_v2 = vsel %vm428_vm2, %v527_v58, %v528_v56  ;;  %v554_v14 = vrot.slane %v549_v13, %v553_v12 }
  0xb7   : > { %v517_v0 = vadd.f32 %v515_v62, %v498_v61  ;;  %v538_v1 = vadd.f32 %v488_v59, %v439_v60 }
  0xb9   : > { %v531_v4 = vadd.f32 %v529_v2, %v517_v0  ;;  %v539_v5 = vadd.f32 %v538_v1, %v385_v63 }
  0xbb   : > { %v537_v6 = vadd.f32 %v1296_v3, %v531_v4  ;;  %v540_v7 = vpack.c.bf16 %v539_v5, %v539_v5 }
  0xbd   : > { %542 = vst.msk [vmem:[#allocation2] sm:$0xf] %vm541_vm3, %v540_v7  ;;  %v543_v8 = vadd.f32 %v539_v5, %v537_v6 }
  0xbf   : > { %1329 = vmatpush3.xpose.msk.msra.mxu0 %vm555_vm4, %v543_v8 }
  0xc2   : > { %1331 = vmatmul.mubr.msk.f32.vlgmr.msra.gmra.mrb[0].mxu0 %vm555_vm4, %v544_v9 }
 0x195   : > { %v628_v15 = vpop.f32.mrb[0].mxu0 }
 0x196   : > { %v629_v16 = vadd.f32 %v628_v15, %v554_v14  ;;  %v1332_v17 = vpop.f32.mrb[1].mxu0 }
 0x198   : > { %v633_v18 = vmin.f32 %v629_v16, 20.0  ;;  %vm632_vm7 = vcmp.gt.f32.partialorder %v629_v16, 20.0 }
 0x19a   : > { %v634_v19 = vmul.f32 1.442695, %v633_v18 }
 0x19c   : > { %1437 = vpow2.f32 %v634_v19 }
 0x1a6   : > { %v1438_v20 = vpop.eup %1437 }
 0x1a7   : > { %v636_v21 = vadd.f32 1.0, %v1438_v20  ;;  %v639_v22 = vmul.f32 -0.5, %v1438_v20  ;;  %v642_v24 = vand.u32 2147483647, %v1438_v20 }
 0x1a9   : > { %1439 = vlog2.f32 %v636_v21  ;;  %v640_v23 = vadd.f32 1.0, %v639_v22  ;;  %vm643_vm5 = vcmp.lt.f32.partialorder %v642_v24, 0.0004427343 }
 0x1ab   : > { %v641_v28 = vmul.f32 %v1438_v20, %v640_v23 }
 0x1b3   : > { %v1440_v26 = vpop.eup %1439 }
 0x1b4   : > { %v638_v27 = vmul.f32 0.6931472, %v1440_v26 }
 0x1b6   : > { %v644_v29 = vsel %vm643_vm5, %v641_v28, %v638_v27 }
 0x1b7   : > { %v645_v30 = vsel %vm632_vm7, %v629_v16, %v644_v29 }
 0x1b8   : > { %v647_v31 = vsel %vm646_vm6, 1e-08, %v645_v30 }
 0x1b9   : > { %v648_v32 = vmul.f32 2.0, %v647_v31  ;;  %1441 = vlog2.f32 %v647_v31 }
 0x1bb   : > { %v649_v33 = vmul.f32 %v648_v32, %v647_v31 }
 0x1bd   : > { %1443 = vrcp.f32 %v649_v33 }
 0x1c3   : > { %v1442_v34 = vpop.eup %1441 }
 0x1c4   : > { %v655_v35 = vmul.f32 0.6931472, %v1442_v34 }
 0x1c6   : > { %v656_v36 = vsub.f32 0.0, %v655_v35 }
 0x1c7   : > { %v1444_v37 = vpop.eup %1443 }
 0x1c8   : > { %v651_v38 = vmul.f32 -1.0, %v1444_v37  ;;  %v1299_v39 = vadd.f32 -0.9189385, %v656_v36 }
 0x1ca   : > { %653 = vst.msk [vmem:[#allocation3] sm:$0x1] %vm652_vm8, %v651_v38  ;;  %v658_v40 = vsel %vm646_vm6, -1e+30, %v1299_v39 }
 0x1cb   : > { %659 = vst.msk [vmem:[#allocation4] sm:$0x1] %vm652_vm8, %v658_v40 }
 0x1cc PF: > { %v661_v41 = vlaneseq  ;;  %s1300_s9 = sshll.u32 %s1587_s10, 7  ;;  %v660_v43 = vld [vmem:[%s1744_s16] sm:$0x3]  ;;  %vm828_vm9 = vcmask 64512   ;;  %vm958_vm10 = vcmask 1043456   ;;  %s1312_s18 = sshll.u32 %s1591_s11, 1 }
 0x1cd   : > { %s695_s28 = sadd.s32 1, %s1300_s9  ;;  %s1134_s21 = sadd.s32 %s1587_s10, %s1312_s18 }
 0x1ce   : > { %v1808_v42 = vshrl.u32 %v661_v41, 7  ;;  %s696_s15 = scvt.s32.f32 %s695_s28  ;;  %s1313_s22 = sshll.u32 %s1134_s21, 7 }
 0x1cf   : > { %s1138_s23 = sshll.u32 %s354_s6, 4  ;;  %s2128_s12 = sld [smem:[#allocation19_spill]]  ;;  %s2005_s23 = int_to_ptr.vmem [resolvable:$true] %s1138_s23 }
 0x1d0   : > { %v678_v44 = vcvt.s32.f32 %v1808_v42  ;;  %v1812_v45 = vstv %s696_s15  ;;  %v716_v46 = vsub.s32 1, %v1808_v42  ;;  %v670_v47 = vadd.s32 64, %v1808_v42  ;;  %s2130_s14 = sand.u32 1, %s1579_s30   ;;  %s1509_s11 = scalar_lea.vmem %s2005_s23, 128 }
 0x1d1   : > { %v663_v48 = vadd.s32 8, %v1808_v42  ;;  %v671_v49 = vadd.s32 72, %v1808_v42  ;;  %v664_v50 = vadd.s32 16, %v1808_v42  ;;  %v665_v51 = vadd.s32 24, %v1808_v42  ;;  %v1827_v0 = vld [vmem:[#allocation3] ss:$0 sm:$0xff]  ;;  %p1510_p1 = scmp.ne.s32.totalorder %s2005_s23, %s1509_s11 }
 0x1d2   : > { %v698_v52 = vadd.f32 %v1812_v45, %v678_v44  ;;  %v1821_v53 = vrot.slane %v660_v43, %v716_v46  ;;  %v686_v54 = vcvt.s32.f32 %v670_v47  ;;  %v672_v55 = vadd.s32 80, %v1808_v42  ;;  %v1835_v9 = vld [vmem:[#allocation4] ss:$0 sm:$0xff]  ;;  %s1119_s20 = scalar_lea.sflag [#allocation7], %s2130_s14  ;;  %s1610_s10 = smov [#allocation6]  }
 0x1d3   : > { %v679_v56 = vcvt.s32.f32 %v663_v48  ;;  %v687_v57 = vcvt.s32.f32 %v671_v49  ;;  %v680_v58 = vcvt.s32.f32 %v664_v50  ;;  %v681_v59 = vcvt.s32.f32 %v665_v51  ;;  %p1511_p2 = pnand %p1510_p1, %p1710_p3  ;;  %s1513_s24 = sshll.u32 %s1610_s10, 4  ;;  %s1514_s24 = int_to_ptr.vmem [resolvable:$false] %s1513_s24 }
 0x1d4   : > { %v718_v60 = vsub.f32 %v698_v52, %v1821_v53  ;;  %v706_v61 = vadd.f32 %v1812_v45, %v686_v54  ;;  %v688_v62 = vcvt.s32.f32 %v672_v55  ;;  %v673_v63 = vadd.s32 88, %v1808_v42  ;;  %s1515_s25 = scalar_lea.vmem %s1514_s24, 256  ;;  %p1516_p5 = scmp.lt.s32.totalorder %s2005_s23, %s1514_s24 }
 0x1d5   : > { %v699_v1 = vadd.f32 %v1812_v45, %v679_v56  ;;  %v707_v2 = vadd.f32 %v1812_v45, %v687_v57  ;;  %v700_v3 = vadd.f32 %v1812_v45, %v680_v58  ;;  %v701_v4 = vadd.f32 %v1812_v45, %v681_v59  ;;  %s2129_s17 = smov %s2128_s12  ;;  %s2003_s13 = scalar_lea.hbm %s2128_s12, %s1313_s22 }
 0x1d6   : > { %v734_v5 = vmul.f32 %v718_v60, %v718_v60  ;;  %v726_v6 = vsub.f32 %v706_v61, %v1821_v53  ;;  %v708_v7 = vadd.f32 %v1812_v45, %v688_v62  ;;  %v689_v8 = vcvt.s32.f32 %v673_v63  ;;  %p1512_p4 = pneg %p1511_p2  ;;  %p1517_p6 = scmp.lt.s32.totalorder %s1515_s25, %s1509_s11 }
 0x1d7   : > { %v719_v10 = vsub.f32 %v699_v1, %v1821_v53  ;;  %v727_v11 = vsub.f32 %v707_v2, %v1821_v53  ;;  %v720_v12 = vsub.f32 %v700_v3, %v1821_v53  ;;  %v721_v13 = vsub.f32 %v701_v4, %v1821_v53 }
 0x1d8   : > { %v757_v14 = vmul.f32 %v1827_v0, %v734_v5  ;;  %v742_v15 = vmul.f32 %v726_v6, %v726_v6  ;;  %v728_v16 = vsub.f32 %v708_v7, %v1821_v53  ;;  %v709_v17 = vadd.f32 %v1812_v45, %v689_v8  ;;  %p1518_p7 = por %p1517_p6, %p1516_p5 }
 0x1d9   : > { %v735_v18 = vmul.f32 %v719_v10, %v719_v10  ;;  %v743_v19 = vmul.f32 %v727_v11, %v727_v11  ;;  %v736_v20 = vmul.f32 %v720_v12, %v720_v12  ;;  %v737_v21 = vmul.f32 %v721_v13, %v721_v13 }
 0x1da   : > { %v780_v22 = vadd.f32 %v1835_v9, %v757_v14  ;;  %v765_v23 = vmul.f32 %v1827_v0, %v742_v15  ;;  %v744_v24 = vmul.f32 %v728_v16, %v728_v16  ;;  %v729_v25 = vsub.f32 %v709_v17, %v1821_v53  ;;  %p1519_p9 = pnand %p1518_p7, %p1512_p4 }
 0x1db   : > { %v758_v26 = vmul.f32 %v1827_v0, %v735_v18  ;;  %v766_v27 = vmul.f32 %v1827_v0, %v743_v19  ;;  %v759_v28 = vmul.f32 %v1827_v0, %v736_v20  ;;  %v760_v29 = vmul.f32 %v1827_v0, %v737_v21 }
 0x1dc   : > { %v796_v30 = vmul.f32 1.442695, %v780_v22  ;;  %v788_v31 = vadd.f32 %v1835_v9, %v765_v23  ;;  %v767_v32 = vmul.f32 %v1827_v0, %v744_v24  ;;  %v745_v33 = vmul.f32 %v729_v25, %v729_v25 }
 0x1dd   : > { %v781_v34 = vadd.f32 %v1835_v9, %v758_v26  ;;  %v789_v35 = vadd.f32 %v1835_v9, %v766_v27  ;;  %v782_v36 = vadd.f32 %v1835_v9, %v759_v28  ;;  %v783_v37 = vadd.f32 %v1835_v9, %v760_v29 }
 0x1de   : > { %1445 = vpow2.f32 %v796_v30  ;;  %v812_v38 = vmul.f32 1.442695, %v788_v31  ;;  %v790_v39 = vadd.f32 %v1835_v9, %v767_v32  ;;  %v768_v40 = vmul.f32 %v1827_v0, %v745_v33 }
 0x1df   : > { %v798_v41 = vmul.f32 1.442695, %v781_v34  ;;  %v814_v43 = vmul.f32 1.442695, %v789_v35  ;;  %v800_v44 = vmul.f32 1.442695, %v782_v36 }
 0x1e0   : > { %1447 = vpow2.f32 %v812_v38  ;;  %v802_v46 = vmul.f32 1.442695, %v783_v37  ;;  %v816_v47 = vmul.f32 1.442695, %v790_v39  ;;  %v791_v48 = vadd.f32 %v1835_v9, %v768_v40 }
 0x1e1   : > { %1449 = vpow2.f32 %v798_v41  ;;  %v666_v49 = vadd.s32 32, %v1808_v42  ;;  %v667_v50 = vadd.s32 40, %v1808_v42  ;;  %v674_v51 = vadd.s32 96, %v1808_v42 }
 0x1e2   : > { %1451 = vpow2.f32 %v814_v43  ;;  %v818_v52 = vmul.f32 1.442695, %v791_v48  ;;  %v675_v54 = vadd.s32 104, %v1808_v42  ;;  %v668_v55 = vadd.s32 48, %v1808_v42 }
 0x1e3   : > { %1453 = vpow2.f32 %v800_v44  ;;  %v682_v56 = vcvt.s32.f32 %v666_v49  ;;  %v683_v57 = vcvt.s32.f32 %v667_v50  ;;  %v690_v58 = vcvt.s32.f32 %v674_v51 }
 0x1e4   : > { %1455 = vpow2.f32 %v802_v46  ;;  %v691_v59 = vcvt.s32.f32 %v675_v54  ;;  %v684_v60 = vcvt.s32.f32 %v668_v55  ;;  %v669_v61 = vadd.s32 56, %v1808_v42 }
 0x1e5   : > { %v702_v62 = vadd.f32 %v1812_v45, %v682_v56  ;;  %v703_v63 = vadd.f32 %v1812_v45, %v683_v57  ;;  %v710_v1 = vadd.f32 %v1812_v45, %v690_v58  ;;  %1457 = vpow2.f32 %v816_v47 }
 0x1e6   : > { %v711_v2 = vadd.f32 %v1812_v45, %v691_v59  ;;  %v704_v3 = vadd.f32 %v1812_v45, %v684_v60  ;;  %v685_v4 = vcvt.s32.f32 %v669_v61  ;;  %v677_v8 = vadd.s32 120, %v1808_v42 }
 0x1e7   : > { %v722_v5 = vsub.f32 %v702_v62, %v1821_v53  ;;  %v723_v6 = vsub.f32 %v703_v63, %v1821_v53  ;;  %v730_v7 = vsub.f32 %v710_v1, %v1821_v53  ;;  %1459 = vpow2.f32 %v818_v52 }
 0x1e8   : > { %v1875_v10 = vpop.eup %1445  ;;  %v731_v11 = vsub.f32 %v711_v2, %v1821_v53  ;;  %v724_v12 = vsub.f32 %v704_v3, %v1821_v53  ;;  %v705_v13 = vadd.f32 %v1812_v45, %v685_v4  ;;  %v693_v22 = vcvt.s32.f32 %v677_v8 }
 0x1e9   : > { %v829_v14 = vsel %vm828_vm9, %v1875_v10, 0.0  ;;  %v738_v15 = vmul.f32 %v722_v5, %v722_v5  ;;  %v739_v16 = vmul.f32 %v723_v6, %v723_v6  ;;  %v746_v17 = vmul.f32 %v730_v7, %v730_v7 }
 0x1ea   : > { %v1882_v18 = vpop.eup %1447  ;;  %830 = vadd.xlane.f32.xlu0 %v829_v14  ;;  %v747_v19 = vmul.f32 %v731_v11, %v731_v11  ;;  %v740_v20 = vmul.f32 %v724_v12, %v724_v12  ;;  %v725_v21 = vsub.f32 %v705_v13, %v1821_v53  ;;  %v676_v43 = vadd.s32 112, %v1808_v42 }
 0x1eb   : > { %v1885_v23 = vpop.eup %1449  ;;  %v853_v24 = vsel %vm828_vm9, %v1882_v18, 0.0  ;;  %v761_v25 = vmul.f32 %v1827_v0, %v738_v15  ;;  %v762_v26 = vmul.f32 %v1827_v0, %v739_v16  ;;  %v769_v27 = vmul.f32 %v1827_v0, %v746_v17 }
 0x1ec   : > { %v1892_v28 = vpop.eup %1451  ;;  %854 = vadd.xlane.f32.xlu1 %v853_v24  ;;  %v832_v29 = vsel %vm828_vm9, %v1885_v23, 0.0  ;;  %v770_v30 = vmul.f32 %v1827_v0, %v747_v19  ;;  %v763_v31 = vmul.f32 %v1827_v0, %v740_v20  ;;  %v741_v32 = vmul.f32 %v725_v21, %v725_v21  ;;  %v933_v24 = vld [vmem:[#allocation2] sm:$0xf] }
 0x1ed   : > { %v1898_v33 = vpop.eup %1453  ;;  %v856_v34 = vsel %vm828_vm9, %v1892_v28, 0.0  ;;  %v784_v35 = vadd.f32 %v1835_v9, %v761_v25  ;;  %v785_v36 = vadd.f32 %v1835_v9, %v762_v26  ;;  %v792_v37 = vadd.f32 %v1835_v9, %v769_v27  ;;  %1353 = vmatprep.subr.msk.bf16.mxu0 %vm958_vm10, %v933_v24  ;;  %1354 = vmatprep.subr.msk.bf16.mxu1 %vm958_vm10, %v933_v24 }
 0x1ee   : > { %v1905_v38 = vpop.eup %1455  ;;  %833 = vadd.xlane.f32.xlu0 %v832_v29  ;;  %v793_v39 = vadd.f32 %v1835_v9, %v770_v30  ;;  %v786_v40 = vadd.f32 %v1835_v9, %v763_v31  ;;  %v764_v41 = vmul.f32 %v1827_v0, %v741_v32  ;;  %v835_v44 = vsel %vm828_vm9, %v1898_v33, 0.0 }
 0x1ef   : > { %v804_v46 = vmul.f32 1.442695, %v784_v35  ;;  %v806_v47 = vmul.f32 1.442695, %v785_v36  ;;  %v713_v48 = vadd.f32 %v1812_v45, %v693_v22  ;;  %v1914_v49 = vpop.eup %1457  ;;  %v820_v50 = vmul.f32 1.442695, %v792_v37 }
 0x1f0   : > { %857 = vadd.xlane.f32.xlu1 %v856_v34  ;;  %v822_v51 = vmul.f32 1.442695, %v793_v39  ;;  %v787_v52 = vadd.f32 %v1835_v9, %v764_v41  ;;  %v838_v54 = vsel %vm828_vm9, %v1905_v38, 0.0  ;;  %v808_v55 = vmul.f32 1.442695, %v786_v40 }
 0x1f1   : > { %1461 = vpow2.f32 %v804_v46  ;;  %v733_v42 = vsub.f32 %v713_v48, %v1821_v53  ;;  %v1920_v56 = vpop.eup %1459  ;;  %v692_v58 = vcvt.s32.f32 %v676_v43  ;;  %v859_v59 = vsel %vm828_vm9, %v1914_v49, 0.0 }
 0x1f2   : > { %836 = vadd.xlane.f32.xlu0 %v835_v44  ;;  %1463 = vpow2.f32 %v806_v47  ;;  %v810_v57 = vmul.f32 1.442695, %v787_v52  ;;  %v862_v62 = vsel %vm828_vm9, %v1920_v56, 0.0  ;;  %v960_v25 = vsel %vm958_vm10, %v933_v24, 0 }
 0x1f3   : > { %1465 = vpow2.f32 %v820_v50  ;;  %v749_v60 = vmul.f32 %v733_v42, %v733_v42  ;;  %v712_v61 = vadd.f32 %v1812_v45, %v692_v58  ;;  %1334 = vmatpush3.bf16.msra.mxu0 %v960_v25  ;;  %1352 = vmatpush3.bf16.msra.mxu1 %v960_v25 }
 0x1f4   : > { %839 = vadd.xlane.f32.xlu1 %v838_v54  ;;  %1467 = vpow2.f32 %v822_v51 }
 0x1f5   : > { %1469 = vpow2.f32 %v808_v55  ;;  %v772_v63 = vmul.f32 %v1827_v0, %v749_v60  ;;  %v732_v1 = vsub.f32 %v712_v61, %v1821_v53 }
 0x1f6   : > { %860 = vadd.xlane.f32.xlu0 %v859_v59  ;;  %1471 = vpow2.f32 %v810_v57 }
 0x1f7   : > { %v795_v2 = vadd.f32 %v1835_v9, %v772_v63  ;;  %v748_v3 = vmul.f32 %v732_v1, %v732_v1 }
 0x1f8   : > { %863 = vadd.xlane.f32.xlu1 %v862_v62 }
 0x1f9   : > { %v826_v4 = vmul.f32 1.442695, %v795_v2  ;;  %v771_v5 = vmul.f32 %v1827_v0, %v748_v3 }
 0x1fb   : > { %v1931_v6 = vpop.eup %1461  ;;  %1473 = vpow2.f32 %v826_v4  ;;  %v794_v8 = vadd.f32 %v1835_v9, %v771_v5 }
 0x1fc   : > { %v1933_v45 = vpop.eup %1463  ;;  %v841_v7 = vsel %vm828_vm9, %v1931_v6, 0.0 }
 0x1fd   : > { %v1938_v11 = vpop.eup %1465  ;;  %842 = vadd.xlane.f32.xlu0 %v841_v7  ;;  %v844_v53 = vsel %vm828_vm9, %v1933_v45, 0.0  ;;  %v824_v13 = vmul.f32 1.442695, %v794_v8 }
 0x1fe   : > { %v1942_v12 = vpop.eup %1467  ;;  %845 = vadd.xlane.f32.xlu1 %v844_v53  ;;  %v865_v0 = vsel %vm828_vm9, %v1938_v11, 0.0 }
 0x1ff   : > { %v1946_v14 = vpop.eup %1469  ;;  %v868_v15 = vsel %vm828_vm9, %v1942_v12, 0.0  ;;  %1475 = vpow2.f32 %v824_v13 }
 0x200   : > { %v1950_v16 = vpop.eup %1471  ;;  %v847_v9 = vsel %vm828_vm9, %v1946_v14, 0.0 }
 0x201   : > { %866 = vadd.xlane.f32.xlu0 %v865_v0  ;;  %v850_v17 = vsel %vm828_vm9, %v1950_v16, 0.0 }
 0x202   : > { %869 = vadd.xlane.f32.xlu1 %v868_v15 }
 0x205   : > { %v1956_v19 = vpop.eup %1473  ;;  %848 = vadd.xlane.f32.xlu0 %v847_v9 }
 0x206   : > { %851 = vadd.xlane.f32.xlu1 %v850_v17  ;;  %v874_v20 = vsel %vm828_vm9, %v1956_v19, 0.0 }
 0x209   : > { %v1960_v21 = vpop.eup %1475 }
 0x20a   : > { %875 = vadd.xlane.f32.xlu1 %v874_v20  ;;  %v871_v22 = vsel %vm828_vm9, %v1960_v21, 0.0 }
 0x20b   : > { %872 = vadd.xlane.f32.xlu0 %v871_v22 }
 0x277   : > { %v831_v26 = vpop.xlane.xlu0 %830 }
 0x278   : > { %v877_v27 = vadd.f32 1e-08, %v831_v26 }
 0x279   : > { %v855_v29 = vpop.xlane.xlu1 %854 }
 0x27a   : > { %1477 = vrcp.f32 %v877_v27  ;;  %v885_v30 = vadd.f32 1e-08, %v855_v29 }
 0x27b   : > { %v834_v31 = vpop.xlane.xlu0 %833 }
 0x27c   : > { %v878_v32 = vadd.f32 1e-08, %v834_v31  ;;  %1479 = vrcp.f32 %v885_v30 }
 0x27d   : > { %v858_v34 = vpop.xlane.xlu1 %857 }
 0x27e   : > { %1481 = vrcp.f32 %v878_v32  ;;  %v886_v35 = vadd.f32 1e-08, %v858_v34 }
 0x27f   : > { %v837_v36 = vpop.xlane.xlu0 %836 }
 0x280   : > { %1483 = vrcp.f32 %v886_v35  ;;  %v879_v37 = vadd.f32 1e-08, %v837_v36 }
 0x281   : > { %v840_v39 = vpop.xlane.xlu1 %839 }
 0x282   : > { %1485 = vrcp.f32 %v879_v37  ;;  %v880_v40 = vadd.f32 1e-08, %v840_v39 }
 0x283   : > { %v861_v41 = vpop.xlane.xlu0 %860 }
 0x284   : > { %v1478_v43 = vpop.eup %1477  ;;  %1487 = vrcp.f32 %v880_v40  ;;  %v887_v44 = vadd.f32 1e-08, %v861_v41 }
 0x285   : > { %v864_v46 = vpop.xlane.xlu1 %863  ;;  %v909_v47 = vmul.f32 %v1478_v43, %v1875_v10 }
 0x286   : > { %1489 = vrcp.f32 %v887_v44  ;;  %v888_v48 = vadd.f32 1e-08, %v864_v46  ;;  %v1480_v50 = vpop.eup %1479 }
 0x287   : > { %1076 = vxpose.xlu0.b32.start [1/16] (narrow) %v909_v47, 8  ;;  %v1967_v59 = vmul.f32 %v1480_v50, %v1882_v18 }
 0x288   : > { %v1482_v51 = vpop.eup %1481  ;;  %1491 = vrcp.f32 %v888_v48 }
 0x289   : > { %v910_v52 = vmul.f32 %v1482_v51, %v1885_v23 }
 0x28a   : > { %v1484_v54 = vpop.eup %1483  ;;  %v843_v55 = vpop.xlane.xlu0 %842 }
 0x28b   : > { %v881_v42 = vadd.f32 1e-08, %v843_v55  ;;  %v846_v57 = vpop.xlane.xlu1 %845  ;;  %1077 = vxpose.xlu0.b32.cont [2/16] (narrow) %v910_v52, 8  ;;  %v925_v58 = vpack.c.bf16 %v910_v52, %v909_v47  ;;  %v1970_v60 = vmul.f32 %v1484_v54, %v1892_v28 }
 0x28c   : > { %v1486_v10 = vpop.eup %1485  ;;  %v882_v61 = vadd.f32 1e-08, %v846_v57 }
 0x28d   : > { %1493 = vrcp.f32 %v881_v42  ;;  %1335 = vmatprep.mubr.msk.bf16.mxu0 %vm828_vm9, %v925_v58  ;;  %v929_v23 = vpack.c.bf16 %v1970_v60, %v1967_v59  ;;  %v911_v62 = vmul.f32 %v1486_v10, %v1898_v33 }
 0x28e   : > { %v1488_v63 = vpop.eup %1487  ;;  %1495 = vrcp.f32 %v882_v61  ;;  %v867_v1 = vpop.xlane.xlu0 %866 }
 0x28f   : > { %v889_v2 = vadd.f32 1e-08, %v867_v1  ;;  %v870_v3 = vpop.xlane.xlu1 %869  ;;  %1343 = vmatprep.mubr.msk.bf16.mxu1 %vm828_vm9, %v929_v23  ;;  %1078 = vxpose.xlu0.b32.cont [3/16] (narrow) %v911_v62, 8  ;;  %v912_v18 = vmul.f32 %v1488_v63, %v1905_v38 }
 0x290   : > { %v1490_v28 = vpop.eup %1489  ;;  %v890_v4 = vadd.f32 1e-08, %v870_v3 }
 0x291   : > { %1497 = vrcp.f32 %v889_v2  ;;  %v926_v5 = vpack.c.bf16 %v912_v18, %v911_v62  ;;  %v919_v7 = vmul.f32 %v1490_v28, %v1914_v49 }
 0x292   : > { %v1492_v8 = vpop.eup %1491  ;;  %1499 = vrcp.f32 %v890_v4  ;;  %v849_v53 = vpop.xlane.xlu0 %848 }
 0x293   : > { %v883_v33 = vadd.f32 1e-08, %v849_v53  ;;  %v852_v0 = vpop.xlane.xlu1 %851  ;;  %1079 = vxpose.xlu0.b32.cont [4/16] (narrow) %v912_v18, 8  ;;  %1336 = vmatmul.mubr.msk.bf16.vlgmr.msra.gmra.mrb[0].mxu0 %vm828_vm9, %v926_v5  ;;  %v920_v13 = vmul.f32 %v1492_v8, %v1920_v56 }
 0x294   : > { %v884_v15 = vadd.f32 1e-08, %v852_v0 }
 0x295   : > { %1501 = vrcp.f32 %v883_v33  ;;  %v930_v9 = vpack.c.bf16 %v920_v13, %v919_v7 }
 0x296   : > { %1503 = vrcp.f32 %v884_v15 }
 0x297   : > { %v1494_v38 = vpop.eup %1493  ;;  %v876_v17 = vpop.xlane.xlu1 %875  ;;  %1344 = vmatmul.mubr.msk.bf16.vlgmr.msra.gmra.mrb[0].mxu1 %vm828_vm9, %v930_v9 }
 0x298   : > { %v1496_v20 = vpop.eup %1495  ;;  %v892_v49 = vadd.f32 1e-08, %v876_v17  ;;  %v913_v22 = vmul.f32 %v1494_v38, %v1931_v6  ;;  %v873_v24 = vpop.xlane.xlu0 %872 }
 0x299   : > { %v914_v25 = vmul.f32 %v1496_v20, %v1933_v45  ;;  %v891_v26 = vadd.f32 1e-08, %v873_v24 }
 0x29a   : > { %1505 = vrcp.f32 %v892_v49  ;;  %1080 = vxpose.xlu0.b32.cont [5/16] (narrow) %v913_v22, 8 }
 0x29b   : > { %v1498_v27 = vpop.eup %1497  ;;  %v927_v56 = vpack.c.bf16 %v914_v25, %v913_v22  ;;  %1507 = vrcp.f32 %v891_v26 }
 0x29c   : > { %v1500_v29 = vpop.eup %1499  ;;  %v921_v30 = vmul.f32 %v1498_v27, %v1938_v11 }
 0x29d   : > { %1339 = vmatprep.mubr.msk.bf16.mxu0 %vm828_vm9, %v927_v56  ;;  %v922_v31 = vmul.f32 %v1500_v29, %v1942_v12 }
 0x29e   : > { %1081 = vxpose.xlu0.b32.cont [6/16] (narrow) %v914_v25, 8 }
 0x29f   : > { %v1502_v32 = vpop.eup %1501  ;;  %v931_v34 = vpack.c.bf16 %v922_v31, %v921_v30 }
 0x2a0   : > { %v1504_v6 = vpop.eup %1503  ;;  %v915_v35 = vmul.f32 %v1502_v32, %v1946_v14 }
 0x2a1   : > { %1347 = vmatprep.mubr.msk.bf16.mxu1 %vm828_vm9, %v931_v34  ;;  %v916_v45 = vmul.f32 %v1504_v6, %v1950_v16 }
 0x2a2   : > { %1082 = vxpose.xlu0.b32.cont [7/16] (narrow) %v915_v35, 8 }
 0x2a3   : > { %v928_v36 = vpack.c.bf16 %v916_v45, %v915_v35 }
 0x2a4   : > { %v1506_v37 = vpop.eup %1505 }
 0x2a5   : > { %1340 = vmatmul.mubr.msk.bf16.gmra.mrb[4].mxu0 %vm828_vm9, %v928_v36  ;;  %v924_v11 = vmul.f32 %v1506_v37, %v1956_v19  ;;  %v1508_v12 = vpop.eup %1507 }
 0x2a6   : > { %1083 = vxpose.xlu0.b32.cont [8/16] (narrow) %v916_v45, 8  ;;  %v923_v39 = vmul.f32 %v1508_v12, %v1960_v21 }
 0x2a8   : > { %v932_v40 = vpack.c.bf16 %v924_v11, %v923_v39 }
 0x2aa   : > { %1084 = vxpose.xlu0.b32.cont [9/16] (narrow) %v1967_v59, 8  ;;  %1348 = vmatmul.mubr.msk.bf16.gmra.mrb[4].mxu1 %vm828_vm9, %v932_v40 }
 0x2ae   : > { %1085 = vxpose.xlu0.b32.cont [10/16] (narrow) %v1970_v60, 8 }
 0x2b2   : > { %1086 = vxpose.xlu0.b32.cont [11/16] (narrow) %v919_v7, 8 }
 0x2b6   : > { %1087 = vxpose.xlu0.b32.cont [12/16] (narrow) %v920_v13, 8 }
 0x2ba   : > { %1088 = vxpose.xlu0.b32.cont [13/16] (narrow) %v921_v30, 8 }
 0x2be   : > { %1089 = vxpose.xlu0.b32.cont [14/16] (narrow) %v922_v31, 8 }
 0x2c2   : > { %1090 = vxpose.xlu0.b32.cont [15/16] (narrow) %v923_v39, 8 }
 0x2c6   : > { %1091 = vxpose.xlu0.b32.end [16/16] (narrow) %v924_v11, 8 }
 0x30a   : > { %v1092_v14 = vpop.trf.xlu0 }
 0x30b   : > { %1108 = vst [vmem:[%s354_s6] sm:$0xff] %v1092_v14 }
 0x30c   : > { %1522 = shalt.err (!%p1519_p9)
}
 0x30d   : > { %s1523_s26 = scalar_lea.hbm %s2003_s13, 128  ;;  %s1527_s9 = scalar_lea.hbm %s2129_s17, 512 }
 0x30e   : > { %p1524_p10 = scmp.ne.s32.totalorder %s2003_s13, %s1523_s26  ;;  %p1528_p13 = scmp.lt.u32.totalorder %s2003_s13, %s2129_s17 }
 0x30f   : > { %p1529_p0 = scmp.lt.u32.totalorder %s1527_s9, %s1523_s26  ;;  %p1531_p2 = scmp.lt.u32.totalorder %s1523_s26, %s2003_s13 }
 0x310   : > { %p1525_p11 = pnand %p1524_p10, %p1710_p3 }
 0x311   : > { %p1530_p1 = por %p1529_p0, %p1528_p13 }
 0x312   : > { %p1526_p12 = pneg %p1525_p11 }
 0x313   : > { %p1532_p4 = por %p1531_p2, %p1530_p1 }
 0x315   : > { %p1533_p5 = pnand %p1532_p4, %p1526_p12 }
 0x317   : > { %1536 = shalt.err (!%p1533_p5)
}
 0x318   : > { %1355 = dma.vmem_to_hbm [thread:$0]  (%p1710_p3), %s2005_s23, 128, %s2003_s13, %s1119_s20   ;;  %vm1059_vm11 = vcmask 261120  }
 0x366   : > { %v1337_v16 = vpop.f32.mrb[0].mxu0 }
 0x367   : > { %1062 = vst.msk [vmem:[%s1754_s19 + $0x10] sm:$0xff] %vm1059_vm11, %v1337_v16  ;;  %v996_v19 = vpop.f32.mrb[1].mxu0 }
 0x368   : > { %1060 = vst.msk [vmem:[%s1754_s19] sm:$0xff] %vm1059_vm11, %v996_v19  ;;  %v1338_v21 = vpop.f32.mrb[2].mxu0 }
 0x369   : > { %1063 = vst.msk [vmem:[%s1754_s19 + $0x18] sm:$0xff] %vm1059_vm11, %v1338_v21  ;;  %v999_v41 = vpop.f32.mrb[3].mxu0 }
 0x36a   : > { %1061 = vst.msk [vmem:[%s1754_s19 + $0x8] sm:$0xff] %vm1059_vm11, %v999_v41  ;;  %v1345_v43 = vpop.f32.mrb[0].mxu1 }
 0x36b   : > { %1070 = vst.msk [vmem:[%s1754_s19 + $0x50] sm:$0xff] %vm1059_vm11, %v1345_v43  ;;  %v1028_v44 = vpop.f32.mrb[1].mxu1 }
 0x36c   : > { %1068 = vst.msk [vmem:[%s1754_s19 + $0x40] sm:$0xff] %vm1059_vm11, %v1028_v44  ;;  %v1346_v46 = vpop.f32.mrb[2].mxu1 }
 0x36d   : > { %1071 = vst.msk [vmem:[%s1754_s19 + $0x58] sm:$0xff] %vm1059_vm11, %v1346_v46  ;;  %v1031_v47 = vpop.f32.mrb[3].mxu1 }
 0x36e   : > { %1069 = vst.msk [vmem:[%s1754_s19 + $0x48] sm:$0xff] %vm1059_vm11, %v1031_v47 }
 0x378   : > { %v1341_v48 = vpop.f32.mrb[4].mxu0 }
 0x379   : > { %1066 = vst.msk [vmem:[%s1754_s19 + $0x30] sm:$0xff] %vm1059_vm11, %v1341_v48  ;;  %v1012_v50 = vpop.f32.mrb[5].mxu0 }
 0x37a   : > { %1064 = vst.msk [vmem:[%s1754_s19 + $0x20] sm:$0xff] %vm1059_vm11, %v1012_v50  ;;  %v1342_v51 = vpop.f32.mrb[6].mxu0 }
 0x37b   : > { %1067 = vst.msk [vmem:[%s1754_s19 + $0x38] sm:$0xff] %vm1059_vm11, %v1342_v51  ;;  %v1015_v52 = vpop.f32.mrb[7].mxu0 }
 0x37c   : > { %1065 = vst.msk [vmem:[%s1754_s19 + $0x28] sm:$0xff] %vm1059_vm11, %v1015_v52 }
 0x37d   : > { %v1349_v54 = vpop.f32.mrb[4].mxu1 }
 0x37e   : > { %1074 = vst.msk [vmem:[%s1754_s19 + $0x70] sm:$0xff] %vm1059_vm11, %v1349_v54  ;;  %v1044_v55 = vpop.f32.mrb[5].mxu1 }
 0x37f   : > { %1072 = vst.msk [vmem:[%s1754_s19 + $0x60] sm:$0xff] %vm1059_vm11, %v1044_v55  ;;  %v1350_v42 = vpop.f32.mrb[6].mxu1 }
 0x380   : > { %1075 = vst.msk [vmem:[%s1754_s19 + $0x78] sm:$0xff] %vm1059_vm11, %v1350_v42  ;;  %v1047_v57 = vpop.f32.mrb[7].mxu1 }
 0x381   : > { %1073 = vst.msk [vmem:[%s1754_s19 + $0x68] sm:$0xff] %vm1059_vm11, %v1047_v57 }
 0x382 PF: > { %s2131_s16 = sld [smem:[#allocation13_spill]]  ;;  %s2132_s18 = sld [smem:[#allocation9_spill]] }
 0x388   : > { %p1361_p3 = scmp.ge.s32.totalorder %s2131_s16, 2  ;;  %s1162_s22 = sand.u32 1, %s2132_s18  }
 0x389   : > { %s1163_s23 = scalar_lea.sflag [#allocation7], %s1162_s22 }
 0x38a   : > { %p1358_p6 = pnand %p1361_p3, %p1719_p8 }
 0x38c   : > { %1570 = dma.done.wait (!%p1358_p6), %s1163_s23, 128  }
 0x38d   : > { %1572 = vsyncadd (!%p1358_p6), %s1163_s23, 4294967168  ;;  %s24_s14 = sadd.s32 1, %s2131_s16   ;;  %s2134_s8 = sld [smem:[#allocation10_spill]] }
 0x38e   : > { %p21_p7 = scmp.ge.s32.totalorder %s24_s14, 6   ;;  %s2135_s9 = sld [smem:[#allocation18_spill]] }
 0x38f   : > { %s2136_s10 = sld [smem:[#allocation11_spill]]  ;;  %s2137_s11 = sld [smem:[#allocation12_spill]] }
 0x390   : > { %s2138_s12 = sld [smem:[#allocation14_spill]]  ;;  %s2139_s13 = sld [smem:[#allocation16_spill]] }
 0x391   : > { %s2140_s29 = smov %s1579_s30  ;;  %23 = sbr.rel (!%p21_p7) target bundleno = 8 (0x8), region = 105 }
 0x393   : > { %s2141_s30 = smov %s2134_s8 }
 0x398   :  { %1168 = vsyncpa [#allocation7], 1 }
 0x399   :  { %1170 = vsyncpa [#allocation7 + $0x1], 1 }

</bundles_post_ra>
